<compile_context>
chip_gen: v7x
topology: tpu7x:2x2x1
jax: 0.10.0
libtpu: 0.0.40
codegen_flags: <defaults>
</compile_context>

<pallas_src>
import jax
import jax.numpy as jnp
from jax.experimental import pallas as pl
from jax.experimental.pallas import tpu as pltpu

D_IN, D_HID, D_OUT = 10, 64, 2      # logical sizes (match the PyTorch module)
D_HID_PAD = 128                     # hidden padded to one full lane width
TB = 1024                           # batch tile for the grid-tiled path


def mlp_kernel(x_ref, w1_ref, b1_ref, w2_ref, b2_ref, o_ref):
    # Hidden layer: (tb, 10) @ (10, 128) + (1, 128); sigmoid runs on the EUP path.
    h = jnp.dot(x_ref[...], w1_ref[...], preferred_element_type=jnp.float32)
    h = jax.nn.sigmoid(h + b1_ref[...])
    # Output layer: (tb, 128) @ (128, 2) + (1, 2).
    # Padded hidden units give sigmoid(0)=0.5, but the corresponding rows of w2 are
    # zero, so they contribute nothing.
    out = jnp.dot(h, w2_ref[...], preferred_element_type=jnp.float32) + b2_ref[...]
    o_ref[...] = out.astype(o_ref.dtype)


def prepare_params(w1_t, b1_t, w2_t, b2_t):
    """Torch-layout params (out,in)/(out,) -> transposed; pad only the hidden dim."""
    w1 = jnp.pad(w1_t.T, ((0, 0), (0, D_HID_PAD - D_HID)))               # (10, 128)
    b1 = jnp.pad(b1_t.reshape(1, -1), ((0, 0), (0, D_HID_PAD - D_HID)))  # (1, 128)
    w2 = jnp.pad(w2_t.T, ((0, D_HID_PAD - D_HID), (0, 0)))               # (128, 2)
    b2 = b2_t.reshape(1, -1)                                             # (1, 2)
    return w1, b1, w2, b2


@jax.jit
def mlp_forward(x, w1p, b1p, w2p, b2p):
    """x: (B, 10) float32. Padded params from prepare_params. Returns (B, 2)."""
    B = x.shape[0]

    cost = pl.CostEstimate(
        flops=2 * B * (D_IN * D_HID_PAD + D_HID_PAD * D_OUT),
        transcendentals=B * D_HID_PAD,
        bytes_accessed=4 * (B * D_IN + D_IN * D_HID_PAD + D_HID_PAD
                            + D_HID_PAD * D_OUT + D_OUT + B * D_OUT),
    )
    out_shape = jax.ShapeDtypeStruct((B, D_OUT), jnp.float32)

    if B <= TB:
        # Latency path: no grid / pipelining machinery, everything VMEM-resident.
        return pl.pallas_call(
            mlp_kernel,
            out_shape=out_shape,
            in_specs=[pl.BlockSpec(memory_space=pltpu.MemorySpace.VMEM)] * 5,
            out_specs=pl.BlockSpec(memory_space=pltpu.MemorySpace.VMEM),
            cost_estimate=cost,
        )(x, w1p, b1p, w2p, b2p)

    # Throughput path: batch tiled over a 1-D grid, weights held VMEM-resident.
    # The ragged tail block (B not a multiple of TB) computes garbage rows that are
    # masked on write; rows are independent so this is safe.
    grid = (pl.cdiv(B, TB),)
    return pl.pallas_call(
        mlp_kernel,
        out_shape=out_shape,
        grid=grid,
        in_specs=[
            pl.BlockSpec((TB, D_IN), lambda i: (i, 0)),          # x tile
            pl.BlockSpec((D_IN, D_HID_PAD), lambda i: (0, 0)),   # w1 resident
            pl.BlockSpec((1, D_HID_PAD), lambda i: (0, 0)),      # b1 resident
            pl.BlockSpec((D_HID_PAD, D_OUT), lambda i: (0, 0)),  # w2 resident
            pl.BlockSpec((1, D_OUT), lambda i: (0, 0)),          # b2 resident
        ],
        out_specs=pl.BlockSpec((TB, D_OUT), lambda i: (i, 0)),
        compiler_params=pltpu.CompilerParams(
            dimension_semantics=("parallel",),
        ),
        cost_estimate=cost,
    )(x, w1p, b1p, w2p, b2p)


def init_params(key):
    # PyTorch nn.Linear layout: fc1 weight (64, 10), bias (64,); fc2 weight (2, 64), bias (2,)
    k1, k2, k3, k4 = jax.random.split(key, 4)
    bound1 = 1.0 / jnp.sqrt(10.0)
    bound2 = 1.0 / jnp.sqrt(64.0)
    w1_t = jax.random.uniform(k1, (D_HID, D_IN), jnp.float32, -bound1, bound1)
    b1_t = jax.random.uniform(k2, (D_HID,), jnp.float32, -bound1, bound1)
    w2_t = jax.random.uniform(k3, (D_OUT, D_HID), jnp.float32, -bound2, bound2)
    b2_t = jax.random.uniform(k4, (D_OUT,), jnp.float32, -bound2, bound2)
    return w1_t, b1_t, w2_t, b2_t


def reference(x, w1_t, b1_t, w2_t, b2_t):
    return jax.nn.sigmoid(x @ w1_t.T + b1_t) @ w2_t.T + b2_t


if __name__ == "__main__":
    key = jax.random.PRNGKey(0)
    kx, kx2, kp = jax.random.split(key, 3)

    w1_t, b1_t, w2_t, b2_t = init_params(kp)
    w1p, b1p, w2p, b2p = prepare_params(w1_t, b1_t, w2_t, b2_t)

    # Small-batch / latency path (matches the Titanic-style tiny workload).
    batch = 8
    x = jax.random.normal(kx, (batch, D_IN), dtype=jnp.float32)
    out = jax.block_until_ready(mlp_forward(x, w1p, b1p, w2p, b2p))
    ref = reference(x, w1_t, b1_t, w2_t, b2_t)
    assert out.shape == (batch, D_OUT)
    assert jnp.allclose(out, ref, atol=1e-5, rtol=1e-5)

    # Large-batch / throughput path (grid of 3 tiles with a ragged, masked tail).
    batch2 = 2500
    x2 = jax.random.normal(kx2, (batch2, D_IN), dtype=jnp.float32)
    out2 = jax.block_until_ready(mlp_forward(x2, w1p, b1p, w2p, b2p))
    ref2 = reference(x2, w1_t, b1_t, w2_t, b2_t)
    assert out2.shape == (batch2, D_OUT)
    assert jnp.allclose(out2, ref2, atol=1e-5, rtol=1e-5)

    print("KERNEL_OK")
</pallas_src>

<mosaic_0001>
module attributes {stable_mosaic.version = 11 : i64} {
  func.func @mlp_kernel(%arg0: memref<8x10xf32, #tpu.memory_space<vmem>>, %arg1: memref<10x128xf32, #tpu.memory_space<vmem>>, %arg2: memref<1x128xf32, #tpu.memory_space<vmem>>, %arg3: memref<128x2xf32, #tpu.memory_space<vmem>>, %arg4: memref<1x2xf32, #tpu.memory_space<vmem>>, %arg5: memref<8x2xf32, #tpu.memory_space<vmem>>) attributes {dimension_semantics = [], scalar_prefetch = 0 : i64, scratch_operands = 0 : i64, tpu.core_type = #tpu.core_type<tc>} {
    %c0 = arith.constant 0 : index
    %c0_0 = arith.constant 0 : index
    %0 = vector.load %arg0[%c0, %c0_0] : memref<8x10xf32, #tpu.memory_space<vmem>>, vector<8x10xf32>
    %c0_1 = arith.constant 0 : index
    %c0_2 = arith.constant 0 : index
    %1 = vector.load %arg1[%c0_1, %c0_2] : memref<10x128xf32, #tpu.memory_space<vmem>>, vector<10x128xf32>
    %cst = arith.constant dense<0.000000e+00> : vector<8x128xf32>
    %2 = tpu.matmul %0, %1, %cst {dimension_numbers = #tpu.dot_dimension_numbers<[1], [0], [0], [1], [0, 0, 1, 1], [], []>} : vector<8x10xf32>, vector<10x128xf32>, vector<8x128xf32> -> vector<8x128xf32>
    %c0_3 = arith.constant 0 : index
    %c0_4 = arith.constant 0 : index
    %3 = vector.load %arg2[%c0_3, %c0_4] : memref<1x128xf32, #tpu.memory_space<vmem>>, vector<1x128xf32>
    %4 = vector.broadcast %3 : vector<1x128xf32> to vector<8x128xf32>
    %5 = arith.addf %2, %4 : vector<8x128xf32>
    %6 = arith.negf %5 : vector<8x128xf32>
    %7 = math.exp %6 : vector<8x128xf32>
    %cst_5 = arith.constant 1.000000e+00 : f32
    %8 = vector.broadcast %cst_5 : f32 to vector<8x128xf32>
    %9 = arith.addf %8, %7 : vector<8x128xf32>
    %10 = arith.divf %8, %9 : vector<8x128xf32>
    %c0_6 = arith.constant 0 : index
    %c0_7 = arith.constant 0 : index
    %11 = vector.load %arg3[%c0_6, %c0_7] : memref<128x2xf32, #tpu.memory_space<vmem>>, vector<128x2xf32>
    %cst_8 = arith.constant dense<0.000000e+00> : vector<8x2xf32>
    %12 = tpu.matmul %10, %11, %cst_8 {dimension_numbers = #tpu.dot_dimension_numbers<[1], [0], [0], [1], [0, 0, 1, 1], [], []>} : vector<8x128xf32>, vector<128x2xf32>, vector<8x2xf32> -> vector<8x2xf32>
    %c0_9 = arith.constant 0 : index
    %c0_10 = arith.constant 0 : index
    %13 = vector.load %arg4[%c0_9, %c0_10] : memref<1x2xf32, #tpu.memory_space<vmem>>, vector<1x2xf32>
    %14 = vector.broadcast %13 : vector<1x2xf32> to vector<8x2xf32>
    %15 = arith.addf %12, %14 : vector<8x2xf32>
    %c0_11 = arith.constant 0 : index
    %c0_12 = arith.constant 0 : index
    %16 = vector.load %arg5[%c0_11, %c0_12] : memref<8x2xf32, #tpu.memory_space<vmem>>, vector<8x2xf32>
    tpu.vector_store %arg5[%c0_11, %c0_12], %15 {strides = array<i32>} : memref<8x2xf32, #tpu.memory_space<vmem>>, vector<8x2xf32>,
    return
  }
}

</mosaic_0001>

<bundles_post_ra>
// kernel: mlp_forward.1
= control target key start
LH: loop header
LB: loop body
LE: loop exit
PB: predicated region body
PF: predicated region fallthrough
CT: control target
= control target key end

     0   :  { %vm34_vm0 = vcmask 1041408   ;;  %v316_v0 = vmov 0.0|0.0   ;;  %vm317_vm1 = vmmov 1   ;;  %vm318_vm3 = vmmov 0   ;;  %s416_s1 = inlined_call_operand.vmem [shape: f32[10,128], index: 1, kind: input, shape index: {}]   ;;  %s417_s3 = inlined_call_operand.vmem [shape: f32[128,2], index: 3, kind: input, shape index: {}]   ;;  %s418_s0 = inlined_call_operand.vmem [shape: f32[8,10], index: 0, kind: input, shape index: {}]   ;;  %s419_s2 = inlined_call_operand.vmem [shape: f32[1,128], index: 2, kind: input, shape index: {}]   ;;  %s420_s4 = inlined_call_operand.vmem [shape: f32[1,2], index: 4, kind: input, shape index: {}]   ;;  %s421_s5 = inlined_call_operand.vmem [shape: f32[8,2], index: 5, kind: output, shape index: {}]  }
   0x1   :  { %280 = vmatprep.subr.bf16.mxu0 %v316_v0  ;;  %v21_v1 = vld [vmem:[%s416_s1] sm:$0xff]  ;;  %v22_v2 = vld [vmem:[%s416_s1 + $0x8] sm:$0x3]  ;;  %vm282_vm2 = vmpackc.low %vm34_vm0, %vm317_vm1  ;;  %284 = vmatprep.subr.bf16.mxu1 %v316_v0  ;;  %v319_v4 = vmov 0.0   ;;  %vm30_vm4 = vcmask 80896   ;;  %vm207_vm5 = vcmask 15360  }
   0x2   :  { %v281_v3 = vpack.c.bf16 %v22_v2, %v21_v1  ;;  %242 = vmatprep.mubr.msk.f32.mxu0 %vm318_vm3, %v319_v4  ;;  %v114_v5 = vld [vmem:[%s417_s3] sm:$0xff]  ;;  %v115_v6 = vld [vmem:[%s417_s3 + $0x8] sm:$0xff]  ;;  %277 = vmatprep.mubr.msk.f32.mxu1 %vm318_vm3, %v319_v4  ;;  %v116_v9 = vld [vmem:[%s417_s3 + $0x10] sm:$0xff] }
   0x3   :  { %v285_v7 = vpack.c.bf16 %v115_v6, %v114_v5  ;;  %v20_v8 = vld [vmem:[%s418_s0] sm:$0xff]  ;;  %v117_v10 = vld [vmem:[%s417_s3 + $0x18] sm:$0xff]  ;;  %v119_v13 = vld [vmem:[%s417_s3 + $0x28] sm:$0xff] }
   0x4   :  { %283 = vmatpush3.bf16.msk.msra.mxu0 %vm282_vm2, %v281_v3  ;;  %v288_v11 = vpack.c.bf16 %v117_v10, %v116_v9  ;;  %v118_v12 = vld [vmem:[%s417_s3 + $0x20] sm:$0xff]  ;;  %v120_v15 = vld [vmem:[%s417_s3 + $0x30] sm:$0xff]  ;;  %v121_v16 = vld [vmem:[%s417_s3 + $0x38] sm:$0xff] }
   0x5   :  { %286 = vmatpush3.bf16.msra.mxu1 %v285_v7  ;;  %v291_v14 = vpack.c.bf16 %v119_v13, %v118_v12  ;;  %v294_v17 = vpack.c.bf16 %v121_v16, %v120_v15  ;;  %v122_v18 = vld [vmem:[%s417_s3 + $0x40] sm:$0xff]  ;;  %v123_v19 = vld [vmem:[%s417_s3 + $0x48] sm:$0xff]  ;;  %v124_v21 = vld [vmem:[%s417_s3 + $0x50] sm:$0xff] }
   0x6   :  { %287 = vmatprep.subr.bf16.mxu1 %v316_v0  ;;  %v297_v20 = vpack.c.bf16 %v123_v19, %v122_v18  ;;  %v125_v22 = vld [vmem:[%s417_s3 + $0x58] sm:$0xff]  ;;  %v126_v24 = vld [vmem:[%s417_s3 + $0x60] sm:$0xff]  ;;  %v127_v25 = vld [vmem:[%s417_s3 + $0x68] sm:$0xff] }
   0x7   :  { %243 = vmatmul.mubr.msk.f32.vlgmr.msra.gmra.mrb[0].mxu0 %vm30_vm4, %v20_v8  ;;  %v300_v23 = vpack.c.bf16 %v125_v22, %v124_v21  ;;  %v303_v26 = vpack.c.bf16 %v127_v25, %v126_v24  ;;  %v128_v27 = vld [vmem:[%s417_s3 + $0x70] sm:$0xff]  ;;  %v129_v28 = vld [vmem:[%s417_s3 + $0x78] sm:$0xff]  ;;  %v213_v30 = vld [vmem:[%s419_s2] ss:$0 sm:$0xff] }
   0x8   :  { %v306_v29 = vpack.c.bf16 %v129_v28, %v128_v27  ;;  %v217_v38 = vld [vmem:[%s420_s4] ss:$0 sm:$0xff] }
   0x9   :  { %289 = vmatpush3.bf16.msra.mxu1 %v288_v11 }
   0xa   :  { %290 = vmatprep.subr.bf16.mxu1 %v316_v0 }
   0xd   :  { %292 = vmatpush3.bf16.msra.mxu1 %v291_v14 }
   0xe   :  { %293 = vmatprep.subr.bf16.mxu1 %v316_v0 }
  0x11   :  { %295 = vmatpush3.bf16.msra.mxu1 %v294_v17 }
  0x12   :  { %296 = vmatprep.subr.bf16.mxu1 %v316_v0 }
  0x15   :  { %298 = vmatpush3.bf16.msra.mxu1 %v297_v20 }
  0x16   :  { %299 = vmatprep.subr.bf16.mxu1 %v316_v0 }
  0x19   :  { %301 = vmatpush3.bf16.msra.mxu1 %v300_v23 }
  0x1a   :  { %302 = vmatprep.subr.bf16.mxu1 %v316_v0 }
  0x1d   :  { %304 = vmatpush3.bf16.msra.mxu1 %v303_v26 }
  0x1e   :  { %305 = vmatprep.subr.bf16.mxu1 %v316_v0 }
  0x21   :  { %307 = vmatpush3.bf16.msra.mxu1 %v306_v29 }
  0xda   :  { %v104_v31 = vpop.f32.mrb[0].mxu0 }
  0xdb   :  { %v105_v32 = vadd.f32 %v213_v30, %v104_v31  ;;  %v244_v33 = vpop.f32.mrb[1].mxu0 }
  0xdd   :  { %v216_v34 = vmul.f32 -1.442695, %v105_v32 }
  0xdf   :  { %312 = vpow2.f32 %v216_v34 }
  0xe9   :  { %v313_v35 = vpop.eup %312 }
  0xea   :  { %v111_v36 = vadd.f32 1.0, %v313_v35 }
  0xec   :  { %314 = vrcp.f32 %v111_v36 }
  0xf6   :  { %v315_v37 = vpop.eup %314 }
  0xf7   :  { %278 = vmatmul.mubr.f32.vlgmr.msra.gmra.mrb[0].mxu1 %v315_v37 }
 0x1ca   :  { %v203_v39 = vpop.f32.mrb[0].mxu1 }
 0x1cb   :  { %v204_v40 = vadd.f32 %v217_v38, %v203_v39  ;;  %v279_v41 = vpop.f32.mrb[1].mxu1 }
 0x1cd   :  { %208 = vst.msk [vmem:[%s421_s5] sm:$0xff] %vm207_vm5, %v204_v40 }

</bundles_post_ra>
